<compile_context>
chip_gen: v7x
topology: tpu7x:2x2x1
jax: 0.10.0
libtpu: 0.0.40
codegen_flags: <defaults>
</compile_context>

<pallas_src>
import jax
import jax.numpy as jnp
from jax.experimental import pallas as pl
from jax.experimental.pallas import tpu as pltpu

_TWO_PI = 6.283185307179586
_INV_65536 = 1.0 / 65536.0
_BLOCK_ROWS = 512  # 512x128 i32 in (256 KiB), 1024x128 f32 out (512 KiB) per block


def _box_muller_kernel(bits_ref, o_ref):
    """bits_ref: [Rb, 128] int32 random words -> o_ref: [2*Rb, 128] f32 N(0,1)."""
    bits = bits_ref[...]
    rb = bits.shape[0]
    # Split each 32-bit word into two independent 16-bit uniforms.
    # (>> then & 0xFFFF is sign-safe for int32: the mask drops sign-extension.)
    hi = (bits >> 16) & 0xFFFF
    lo = bits & 0xFFFF
    u1 = hi.astype(jnp.float32) * _INV_65536          # [0, 1 - 2^-16]
    u2 = lo.astype(jnp.float32) * _INV_65536
    # Box-Muller.  1 - u1 in [2^-16, 1] -> log finite; normal tail truncated at
    # ~4.7 sigma, which is fine for a mock reward (documented deviation from
    # torch.randn's exact stream).
    r = jnp.sqrt(-2.0 * jnp.log(1.0 - u1))
    theta = _TWO_PI * u2
    o_ref[:rb, :] = r * jnp.cos(theta)
    o_ref[rb:, :] = r * jnp.sin(theta)


def _reward_normals(key, n):
    """Return n iid standard-normal f32 samples using the Pallas kernel."""
    words = max(1, -(-n // 2))                 # one 32-bit word -> 2 normals
    rows = -(-words // 128)                    # pack words onto 128-lane rows
    rows = max(8, -(-rows // 8) * 8)           # sublane multiple of 8
    if rows > _BLOCK_ROWS:
        rows = -(-rows // _BLOCK_ROWS) * _BLOCK_ROWS
        block_rows = _BLOCK_ROWS
    else:
        block_rows = rows
    grid = rows // block_rows

    bits = jax.random.bits(key, (rows, 128), dtype=jnp.uint32)
    bits = jax.lax.bitcast_convert_type(bits, jnp.int32)

    out = pl.pallas_call(
        _box_muller_kernel,
        out_shape=jax.ShapeDtypeStruct((2 * rows, 128), jnp.float32),
        grid=(grid,),
        in_specs=[pl.BlockSpec((block_rows, 128), lambda i: (i, 0))],
        out_specs=pl.BlockSpec((2 * block_rows, 128), lambda i: (i, 0)),
        compiler_params=pltpu.CompilerParams(dimension_semantics=("parallel",)),
    )(bits)
    return out.reshape(-1)[:n]


def init_mock_reward_params(key, output_dim=1):
    """nn.Linear(10, output_dim) parameters (present in __init__, unused by forward)."""
    kw, kb = jax.random.split(key)
    weight = jax.random.normal(kw, (output_dim, 10), jnp.float32) * 0.1
    bias = jax.random.normal(kb, (output_dim,), jnp.float32) * 0.01
    return {"weight": weight, "bias": bias}


def mock_reward_forward(input_ids, params, *, output_dim=1, seed=0,
                        attention_mask=None, return_dict=True):
    """Pallas equivalent of MockRewardModel.forward."""
    # TODO(synk): nn.Linear(10, output_dim) and attention_mask are dead in the
    # reference forward; kept only for interface parity.
    del params, attention_mask
    batch = input_ids.shape[0]
    n = batch * output_dim
    key = jax.random.PRNGKey(seed)
    normals = _reward_normals(key, n)
    rewards = normals.reshape(batch, output_dim)
    if output_dim == 1:
        rewards = jnp.squeeze(rewards, axis=-1)       # matches .squeeze(-1)
    if return_dict:
        return {"rewards": rewards}
    return rewards


if __name__ == "__main__":
    key = jax.random.PRNGKey(0)
    k_params, k_ids = jax.random.split(key)

    output_dim = 1
    params = init_mock_reward_params(k_params, output_dim=output_dim)

    batch, seq = 2, 8
    input_ids = jax.random.randint(k_ids, (batch, seq), 0, 1000, dtype=jnp.int32)
    attention_mask = jnp.ones((batch, seq), dtype=jnp.int32)

    out = mock_reward_forward(input_ids, params, output_dim=output_dim,
                              seed=0, attention_mask=attention_mask,
                              return_dict=True)
    rewards = jax.block_until_ready(out["rewards"])

    assert rewards.shape == (batch,), rewards.shape
    assert rewards.dtype == jnp.float32, rewards.dtype
    assert bool(jnp.all(jnp.isfinite(rewards))), "non-finite rewards"
    print("KERNEL_OK")
</pallas_src>

<mosaic_0001>
module attributes {stable_mosaic.version = 11 : i64} {
  func.func @_box_muller_kernel(%arg0: i32, %arg1: memref<8x128xi32, #tpu.memory_space<vmem>>, %arg2: memref<16x128xf32, #tpu.memory_space<vmem>>) attributes {dimension_semantics = [#tpu.dimension_semantics<parallel>], iteration_bounds = array<i64: 1>, scalar_prefetch = 0 : i64, scratch_operands = 0 : i64, tpu.core_type = #tpu.core_type<tc>, window_params = [{transform_indices = @transform_0, window_bounds = array<i64: 8, 128>}, {transform_indices = @transform_1, window_bounds = array<i64: 16, 128>}]} {
    %c0 = arith.constant 0 : index
    %c0_0 = arith.constant 0 : index
    %0 = vector.load %arg1[%c0, %c0_0] : memref<8x128xi32, #tpu.memory_space<vmem>>, vector<8x128xi32>
    %c16_i32 = arith.constant 16 : i32
    %1 = vector.broadcast %c16_i32 : i32 to vector<8x128xi32>
    %2 = arith.shrsi %0, %1 : vector<8x128xi32>
    %c65535_i32 = arith.constant 65535 : i32
    %3 = vector.broadcast %c65535_i32 : i32 to vector<8x128xi32>
    %4 = arith.andi %2, %3 : vector<8x128xi32>
    %c65535_i32_1 = arith.constant 65535 : i32
    %5 = vector.broadcast %c65535_i32_1 : i32 to vector<8x128xi32>
    %6 = arith.andi %0, %5 : vector<8x128xi32>
    %7 = arith.sitofp %4 : vector<8x128xi32> to vector<8x128xf32>
    %cst = arith.constant 1.52587891E-5 : f32
    %8 = vector.broadcast %cst : f32 to vector<8x128xf32>
    %9 = arith.mulf %7, %8 : vector<8x128xf32>
    %10 = arith.sitofp %6 : vector<8x128xi32> to vector<8x128xf32>
    %cst_2 = arith.constant 1.52587891E-5 : f32
    %11 = vector.broadcast %cst_2 : f32 to vector<8x128xf32>
    %12 = arith.mulf %10, %11 : vector<8x128xf32>
    %cst_3 = arith.constant 1.000000e+00 : f32
    %13 = vector.broadcast %cst_3 : f32 to vector<8x128xf32>
    %14 = arith.subf %13, %9 : vector<8x128xf32>
    %15 = math.log %14 : vector<8x128xf32>
    %cst_4 = arith.constant -2.000000e+00 : f32
    %16 = vector.broadcast %cst_4 : f32 to vector<8x128xf32>
    %17 = arith.mulf %16, %15 : vector<8x128xf32>
    %18 = math.sqrt %17 : vector<8x128xf32>
    %cst_5 = arith.constant 6.28318548 : f32
    %19 = vector.broadcast %cst_5 : f32 to vector<8x128xf32>
    %20 = arith.mulf %19, %12 : vector<8x128xf32>
    %21 = math.cos %20 : vector<8x128xf32>
    %22 = arith.mulf %18, %21 : vector<8x128xf32>
    %c0_6 = arith.constant 0 : index
    %c0_7 = arith.constant 0 : index
    %23 = vector.load %arg2[%c0_6, %c0_7] : memref<16x128xf32, #tpu.memory_space<vmem>>, vector<8x128xf32>
    tpu.vector_store %arg2[%c0_6, %c0_7], %22 {strides = array<i32>} : memref<16x128xf32, #tpu.memory_space<vmem>>, vector<8x128xf32>,
    %24 = math.sin %20 : vector<8x128xf32>
    %25 = arith.mulf %18, %24 : vector<8x128xf32>
    %c8 = arith.constant 8 : index
    %c0_8 = arith.constant 0 : index
    %26 = vector.load %arg2[%c8, %c0_8] : memref<16x128xf32, #tpu.memory_space<vmem>>, vector<8x128xf32>
    tpu.vector_store %arg2[%c8, %c0_8], %25 {strides = array<i32>} : memref<16x128xf32, #tpu.memory_space<vmem>>, vector<8x128xf32>,
    return
  }
  func.func @transform_0(%arg0: i32) -> (i32, i32) {
    %c0_i32 = arith.constant 0 : i32
    %c0_i32_0 = arith.constant 0 : i32
    return %arg0, %c0_i32 : i32, i32
  }
  func.func @transform_1(%arg0: i32) -> (i32, i32) {
    %c0_i32 = arith.constant 0 : i32
    %c0_i32_0 = arith.constant 0 : i32
    return %arg0, %c0_i32 : i32, i32
  }
}

</mosaic_0001>

<bundles_post_ra>
// kernel: tpu_custom_call.1
= control target key start
LH: loop header
LB: loop body
LE: loop exit
PB: predicated region body
PF: predicated region fallthrough
CT: control target
= control target key end

     0   :  { %6 = vsyncpa [#allocation3], 0  ;;  %s416_s0 = inlined_call_operand.hbm [shape: s32[8,128], index: 0, kind: input, shape index: {}]   ;;  %s417_s1 = inlined_call_operand.hbm [shape: f32[16,128], index: 1, kind: output, shape index: {}]  }
   0x1   :  { %7 = vsyncpa [#allocation4], 0  ;;  %s348_s6 = smov [#allocation2]   ;;  %s300_s10 = scalar_lea.hbm %s416_s0, 128 }
   0x2   :  { %s14_s7 = sshll.u32 %s348_s6, 4  ;;  %p301_p0 = scmp.ne.s32.totalorder %s416_s0, %s300_s10  ;;  %s15_s7 = int_to_ptr.vmem [resolvable:$true] %s14_s7 }
   0x3   :  { %p304_p1 = scmp.lt.u32.totalorder %s300_s10, %s416_s0 }
   0x5   :  { %p306_p2 = pnand %p304_p1, %p301_p0 }
   0x7   :  { %309 = shalt.err (!%p306_p2)
}
   0x8   :  { %s310_s15 = scalar_lea.vmem %s15_s7, 128  ;;  %p315_p4 = scmp.lt.s32.totalorder %s15_s7, %s15_s7 }
   0x9   :  { %p311_p3 = scmp.ne.s32.totalorder %s15_s7, %s310_s15  ;;  %p316_p5 = scmp.lt.s32.totalorder %s310_s15, %s310_s15 }
   0xb   :  { %p317_p6 = por %p316_p5, %p315_p4 }
   0xd   :  { %p318_p7 = pnand %p317_p6, %p311_p3 }
   0xf   :  { %321 = shalt.err (!%p318_p7)
}
  0x10   :  { %17 = dma.hbm_to_vmem [thread:$0]  %s416_s0, 128, %s15_s7, [#allocation3]  }
  0x11   :  { %344 = dma.done.wait [#allocation3], 128  }
  0x12   :  { %345 = vsyncadd [#allocation3], 4294967168  ;;  %v21_v0 = vld [vmem:[#allocation2] sm:$0xff]  ;;  %v349_v15 = vmov 683565275   ;;  %s355_s0 = smov [#allocation5]  }
  0x13   :  { %v24_v1 = vand.u32 65535, %v21_v0  ;;  %v350_v17 = vmov 2475754826   ;;  %v351_v19 = vmov 2131351028   ;;  %v269_v47 = vshrl.u32 %v21_v0, 16 }
  0x14   :  { %v352_v23 = vmov 2102212464   ;;  %v353_v28 = vmov 920167782   ;;  %v354_v34 = vmov 1326507024  }
  0x15   :  { %v27_v2 = vcvt.s32.f32 %v24_v1  ;;  %v25_v57 = vcvt.s32.f32 %v269_v47  ;;  %s257_s18 = sshll.u32 %s355_s0, 4  ;;  %s258_s18 = int_to_ptr.vmem [resolvable:$true] %s257_s18 }
  0x16   :  { %s322_s19 = scalar_lea.vmem %s258_s18, 256  ;;  %p327_p9 = scmp.lt.s32.totalorder %s258_s18, %s258_s18 }
  0x17   :  { %v28_v3 = vmul.f32 1.5258789e-05, %v27_v2  ;;  %v26_v61 = vmul.f32 1.5258789e-05, %v25_v57  ;;  %p323_p8 = scmp.ne.s32.totalorder %s258_s18, %s322_s19  ;;  %p328_p10 = scmp.lt.s32.totalorder %s322_s19, %s322_s19 }
  0x19   :  { %v380_v4 = vmul.f32 6.2831855, %v28_v3  ;;  %v29_v0 = vsub.f32 1.0, %v26_v61  ;;  %p329_p11 = por %p328_p10, %p327_p9 }
  0x1b   :  { %v44_v5 = vand.u32 2139095040, %v380_v4  ;;  %v41_v9 = vand.u32 2147483647, %v380_v4  ;;  %292 = vlog2.f32 %v29_v0  ;;  %vm43_vm7 = vcmp.lt.s32.totalorder %v380_v4, 0  ;;  %p330_p12 = pnand %p329_p11, %p323_p8 }
  0x1d   :  { %v45_v6 = vshrl.u32 %v44_v5, 23  ;;  %v48_v12 = vand.u32 8388607, %v41_v9  ;;  %vm42_vm8 = vcmp.le.f32.partialorder %v41_v9, 0.7853982 }
  0x1f   :  { %v270_v7 = vadd.s32 4294967169, %v45_v6  ;;  %v49_v26 = vor.u32 8388608, %v48_v12 }
  0x21   :  { %v51_v8 = vadd.s32 1, %v270_v7  ;;  %v89_v40 = vshll.u32 %v49_v26, 8 }
  0x23   :  { %vm52_vm0 = vcmp.gt.s32.totalorder %v51_v8, 0 }
  0x24   :  { %v53_v10 = vsel %vm52_vm0, %v51_v8, 0 }
  0x25   :  { %v55_v11 = vand.u32 31, %v53_v10  ;;  %v54_v13 = vshrl.u32 %v53_v10, 5  ;;  %v293_v10 = vpop.eup %292 }
  0x27   :  { %v56_v14 = vsub.s32 32, %v55_v11  ;;  %v58_v16 = vshll.u32 %v349_v15, %v55_v11  ;;  %v61_v18 = vshll.u32 %v350_v17, %v55_v11  ;;  %v64_v20 = vshll.u32 %v351_v19, %v55_v11 }
  0x28   :  { %v67_v25 = vshll.u32 %v352_v23, %v55_v11  ;;  %v70_v29 = vshll.u32 %v353_v28, %v55_v11  ;;  %vm73_vm1 = vcmp.lt.s32.totalorder %v54_v13, 1  ;;  %vm76_vm2 = vcmp.lt.s32.totalorder %v54_v13, 4 }
  0x29   :  { %v59_v21 = vshrl.u32 %v350_v17, %v56_v14  ;;  %v62_v22 = vshrl.u32 %v351_v19, %v56_v14  ;;  %v65_v24 = vshrl.u32 %v352_v23, %v56_v14  ;;  %v57_v27 = vshrl.u32 %v349_v15, %v56_v14 }
  0x2a   :  { %v68_v33 = vshrl.u32 %v353_v28, %v56_v14  ;;  %v71_v35 = vshrl.u32 %v354_v34, %v56_v14  ;;  %vm75_vm3 = vcmp.lt.s32.totalorder %v54_v13, 3  ;;  %vm74_vm4 = vcmp.lt.s32.totalorder %v54_v13, 2 }
  0x2b   :  { %v60_v30 = vor.u32 %v59_v21, %v58_v16  ;;  %v63_v31 = vor.u32 %v62_v22, %v61_v18  ;;  %v66_v32 = vor.u32 %v65_v24, %v64_v20  ;;  %v31_v15 = vmul.f32 0.6931472, %v293_v10 }
  0x2c   :  { %v69_v36 = vor.u32 %v68_v33, %v67_v25  ;;  %v72_v38 = vor.u32 %v71_v35, %v70_v29 }
  0x2d   :  { %v78_v37 = vsel %vm76_vm2, %v66_v32, 2102212464  ;;  %v81_v39 = vsel %vm73_vm1, %v60_v30, %v63_v31  ;;  %v77_v41 = vsel %vm73_vm1, %v57_v27, %v60_v30  ;;  %v85_v44 = vsel %vm73_vm1, %v63_v31, %v66_v32 }
  0x2e   :  { %v79_v42 = vsel %vm75_vm3, %v63_v31, %v78_v37  ;;  %v82_v43 = vsel %vm76_vm2, %v69_v36, 920167782  ;;  %v86_v46 = vsel %vm76_vm2, %v72_v38, 1326507024  ;;  %v32_v20 = vmul.f32 -2.0, %v31_v15 }
  0x2f   :  { %v83_v45 = vsel %vm75_vm3, %v66_v32, %v82_v43  ;;  %v87_v49 = vsel %vm75_vm3, %v69_v36, %v86_v46  ;;  %v80_v50 = vsel %vm74_vm4, %v77_v41, %v79_v42  ;;  %vm133_vm1 = vweird.f32 %v380_v4 }
  0x30   :  { %v84_v48 = vsel %vm74_vm4, %v81_v39, %v83_v45  ;;  %v88_v51 = vsel %vm74_vm4, %v85_v44, %v87_v49  ;;  %v96_v56 = vmul.u32 %v89_v40, %v80_v50  ;;  %294 = vrsqrt.f32 %v32_v20 }
  0x31   :  { %v389_v52 = vmul.u32.u64.low %v89_v40, %v84_v48  ;;  %v390_v53 = vmul.u32.u64.high %v89_v40, %v84_v48, %v389_v52  ;;  %v392_v54 = vmul.u32.u64.low %v89_v40, %v88_v51  ;;  %v393_v55 = vmul.u32.u64.high %v89_v40, %v88_v51, %v392_v54 }
  0x32   :  { %vm35_vm9 = vcmp.eq.f32.partialorder %v32_v20, inf  ;;  %vm37_vm10 = vcmp.eq.f32.partialorder %v32_v20, 0.0  ;;  %v38_v37 = vand.u32 2147483648, %v32_v20 }
  0x33   :  { %v99_v58 = vadd.s32 1, %v390_v53  ;;  %vm98_vm5 = vc.u32 %v393_v55, %v389_v52  ;;  %v97_v8 = vadd.s32 %v389_v52, %v393_v55 }
  0x35   :  { %v100_v59 = vsel %vm98_vm5, %v99_v58, %v390_v53 }
  0x36   :  { %v101_v60 = vadd.s32 %v100_v59, %v96_v56 }
  0x38   :  { %v102_v62 = vadd.s32 536870912, %v101_v60 }
  0x3a   :  { %v103_v63 = vshrl.u32 %v102_v62, 30  ;;  %v295_v32 = vpop.eup %294 }
  0x3b   :  { %v34_v35 = vmul.f32 %v295_v32, %v32_v20 }
  0x3c   :  { %v104_v1 = vshll.u32 %v103_v63, 30  ;;  %v127_v24 = vsub.s32 4, %v103_v63 }
  0x3d   :  { %v36_v38 = vsel %vm35_vm9, %v32_v20, %v34_v35 }
  0x3e   :  { %v105_v2 = vsub.s32 %v101_v60, %v104_v1  ;;  %v128_v27 = vsel %vm43_vm7, %v127_v24, %v103_v63  ;;  %v39_v43 = vsel %vm37_vm10, %v38_v37, %v36_v38 }
  0x3f   :  { %v130_v30 = vsel %vm42_vm8, 0, %v128_v27 }
  0x40   :  { %v107_v3 = vsub.s32 0, %v105_v2  ;;  %v239_v31 = vadd.s32 3, %v130_v30  ;;  %v134_v33 = vand.u32 3, %v130_v30 }
  0x42   :  { %v271_v5 = vmin.u32 %v107_v3, %v105_v2  ;;  %v240_v34 = vand.u32 3, %v239_v31  ;;  %vm139_vm11 = vcmp.eq.s32.totalorder %v134_v33, 2  ;;  %vm136_vm13 = vcmp.eq.s32.totalorder %v134_v33, 0 }
  0x43   :  { %vm135_vm15 = vcmp.lt.s32.totalorder %v134_v33, 2 }
  0x44   :  { %v109_v6 = vclz %v271_v5  ;;  %vm245_vm12 = vcmp.eq.s32.totalorder %v240_v34, 2  ;;  %vm242_vm14 = vcmp.eq.s32.totalorder %v240_v34, 0  ;;  %vm241_vm0 = vcmp.lt.s32.totalorder %v240_v34, 2 }
  0x46   :  { %v272_v7 = vadd.s32 4294967294, %v109_v6 }
  0x48   :  { %vm273_vm6 = vcmp.lt.s32.totalorder %v272_v7, 0 }
  0x49   :  { %v112_v11 = vsel %vm273_vm6, 0, %v272_v7 }
  0x4a   :  { %v113_v12 = vsub.s32 32, %v112_v11  ;;  %v114_v13 = vshll.u32 %v105_v2, %v112_v11  ;;  %v117_v14 = vsub.s32 4294967266, %v112_v11 }
  0x4c   :  { %v115_v16 = vshrl.u32 %v97_v8, %v113_v12  ;;  %v118_v17 = vadd.s32 127, %v117_v14 }
  0x4e   :  { %v116_v18 = vor.u32 %v115_v16, %v114_v13  ;;  %v119_v19 = vshll.u32 %v118_v17, 23 }
  0x50   :  { %v120_v21 = vor.u32 4788187, %v119_v19  ;;  %v123_v22 = vcvt.s32.f32 %v116_v18 }
  0x52   :  { %v121_v23 = vand.u32 2147483647, %v120_v21 }
  0x54   :  { %v124_v25 = vmul.f32 %v123_v22, %v121_v23 }
  0x56   :  { %v125_v26 = vxor.u32 2147483648, %v124_v25 }
  0x58   :  { %v126_v28 = vsel %vm43_vm7, %v125_v26, %v124_v25 }
  0x59   :  { %v129_v29 = vsel %vm42_vm8, %v380_v4, %v126_v28 }
  0x5a   :  { %296 = vcosq.f32 %v129_v29 }
  0x5b   :  { %298 = vsinq.f32 %v129_v29 }
  0x64   :  { %v297_v36 = vpop.eup %296 }
  0x65   :  { %v299_v9 = vpop.eup %298  ;;  %v140_v39 = vxor.u32 2147483648, %v297_v36 }
  0x66   :  { %v137_v40 = vxor.u32 2147483648, %v299_v9 }
  0x67   :  { %v141_v41 = vsel %vm139_vm11, %v140_v39, %v299_v9  ;;  %v247_v42 = vsel %vm245_vm12, %v140_v39, %v299_v9 }
  0x68   :  { %v138_v44 = vsel %vm136_vm13, %v297_v36, %v137_v40  ;;  %v244_v45 = vsel %vm242_vm14, %v297_v36, %v137_v40 }
  0x69   :  { %v142_v46 = vsel %vm135_vm15, %v138_v44, %v141_v41  ;;  %v248_v47 = vsel %vm241_vm0, %v244_v45, %v247_v42 }
  0x6a   :  { %v143_v48 = vsel %vm133_vm1, nan, %v142_v46  ;;  %v249_v49 = vsel %vm133_vm1, nan, %v248_v47 }
  0x6b   :  { %v144_v50 = vmul.f32 %v143_v48, %v39_v43  ;;  %v250_v51 = vmul.f32 %v249_v49, %v39_v43 }
  0x6d   :  { %145 = vst [vmem:[#allocation5] sm:$0xff] %v144_v50  ;;  %251 = vst [vmem:[#allocation5 + $0x8] sm:$0xff] %v250_v51 }
  0x6e   :  { %333 = shalt.err (!%p330_p12)
}
  0x6f   :  { %s334_s22 = scalar_lea.hbm %s417_s1, 256 }
  0x70   :  { %p335_p13 = scmp.ne.s32.totalorder %s417_s1, %s334_s22  ;;  %p338_p0 = scmp.lt.u32.totalorder %s334_s22, %s417_s1 }
  0x72   :  { %p340_p1 = pnand %p338_p0, %p335_p13 }
  0x74   :  { %343 = shalt.err (!%p340_p1)
}
  0x75   :  { %s356_s27 = smov 128   ;;  %s357_s28 = smov 8  }
  0x76   :  { %263 = dma.vmem_to_hbm [thread:$0]  %s258_s18, 256, %s417_s1, [#allocation4], %s356_s27, %s356_s27, %s357_s28  }
  0x77   :  { %346 = dma.done.wait [#allocation4], 256  }
  0x78   :  { %347 = vsyncadd [#allocation4], 4294967040 }
  0x79   :  { %267 = vsyncpa [#allocation3], 1 }
  0x7a   :  { %268 = vsyncpa [#allocation4], 1 }

</bundles_post_ra>
